<compile_context>
chip_gen: v7x
topology: tpu7x:2x2x1
jax: 0.10.0
libtpu: 0.0.40
codegen_flags: <defaults>
</compile_context>

<pallas_src>
import functools

import jax
import jax.numpy as jnp
from jax.experimental import pallas as pl
from jax.experimental.pallas import tpu as pltpu


def _round_up(x, m):
    return ((x + m - 1) // m) * m


def _sublane_multiple(dtype):
    # 32-bit -> 8 sublanes, 16-bit -> 16, 8-bit -> 32.
    return 8 * max(1, 4 // jnp.dtype(dtype).itemsize)


def _vmem_capacity_bytes():
    try:
        return int(pltpu.get_tpu_info().vmem_capacity_bytes)
    except Exception:
        return 64 << 20  # conservative default (v7x per-TensorCore)


def _balanced_tile(full, cap, align):
    """Largest tile <= cap that splits `full` into equal-ish aligned blocks."""
    if full <= cap:
        return full
    nblocks = -(-full // cap)          # ceil
    return _round_up(-(-full // nblocks), align)


# ------------------------------ kernels -------------------------------------


def _ffn_kernel_multi_k(*refs, negative_slope, residual):
    """(M, N, K) grid, K innermost; f32 VMEM accumulator."""
    if residual:
        x_ref, wt_ref, b_ref, res_ref, o_ref, acc_ref = refs
    else:
        x_ref, wt_ref, b_ref, o_ref, acc_ref = refs
        res_ref = None

    k = pl.program_id(2)

    @pl.when(k == 0)
    def _init():
        acc_ref[...] = jnp.zeros_like(acc_ref)

    acc_ref[...] += jnp.dot(
        x_ref[...], wt_ref[...], preferred_element_type=jnp.float32
    )

    @pl.when(k == pl.num_programs(2) - 1)
    def _finalize():
        y = acc_ref[...] + b_ref[...].astype(jnp.float32)
        y = jnp.maximum(y, negative_slope * y)        # LeakyReLU (0 < slope < 1)
        if residual:
            y = y + res_ref[...].astype(jnp.float32)
        o_ref[...] = y.astype(o_ref.dtype)


def _ffn_kernel_single_k(*refs, negative_slope, residual):
    """(M, N) grid, K collapsed into a single dot; no accumulator scratch."""
    if residual:
        x_ref, wt_ref, b_ref, res_ref, o_ref = refs
    else:
        x_ref, wt_ref, b_ref, o_ref = refs
        res_ref = None

    y = jnp.dot(x_ref[...], wt_ref[...], preferred_element_type=jnp.float32)
    y = y + b_ref[...].astype(jnp.float32)
    y = jnp.maximum(y, negative_slope * y)            # LeakyReLU (0 < slope < 1)
    if residual:
        y = y + res_ref[...].astype(jnp.float32)
    o_ref[...] = y.astype(o_ref.dtype)


# --------------------------- parameter prep ----------------------------------


def prepare_weight(weight, compute_dtype=jnp.bfloat16):
    """One-time prep (OUT of the hot path): nn.Linear weight (n_out, n_inp)
    -> transposed (n_inp, n_out), cast to the MXU compute dtype."""
    return weight.T.astype(compute_dtype)


# ------------------------------ tile logic -----------------------------------


def _select_tiles(M, N, K, compute_dtype, out_dtype, residual):
    csize = jnp.dtype(compute_dtype).itemsize
    osize = jnp.dtype(out_dtype).itemsize
    sub = _sublane_multiple(compute_dtype)

    big_vmem = _vmem_capacity_bytes() >= (100 << 20)   # v5e / v6e (128 MiB)
    if big_vmem:
        tm_cap, tn_cap, tk_cap = 512, 1024, 2048
        vmem_cap = 100 << 20
    else:                                              # v7x (64 MiB / TC)
        tm_cap, tn_cap, tk_cap = 512, 512, 1024
        vmem_cap = 48 << 20

    m_full = _round_up(M, sub)
    n_full = _round_up(N, 128)
    k_full = _round_up(K, 128)

    small_m = m_full <= 256
    if small_m:
        # Decode/inference: keep the whole batch resident, stream wide W panels.
        TM = m_full
        TN = _balanced_tile(n_full, 1024 if big_vmem else 512, 128)
    else:
        TM = _balanced_tile(m_full, tm_cap, sub)
        TN = _balanced_tile(n_full, tn_cap, 128)

    def vmem_need(tk, single_k):
        n = 2 * TM * tk * csize          # x tiles (double-buffered)
        n += 2 * tk * TN * csize         # weight tiles
        n += 2 * TN * 4                  # bias tiles (f32)
        n += 2 * TM * TN * osize         # output tiles
        if residual:
            n += 2 * TM * TN * csize     # residual tiles (compute dtype)
        if not single_k:
            n += TM * TN * 4             # f32 accumulator scratch
        return n

    # Prefer collapsing K: x and W each read once per output panel, no acc RMW.
    if vmem_need(k_full, single_k=True) <= int(vmem_cap * 0.6):
        TK, single_k = k_full, True
    else:
        TK, single_k = _balanced_tile(k_full, tk_cap, 128), False

    return TM, TN, TK, single_k, vmem_cap


def _make_weight_spec(TK, TN, index_map, buffer_count):
    if buffer_count is not None and buffer_count > 2:
        try:
            return pl.BlockSpec((TK, TN), index_map,
                                pipeline_mode=pl.Buffered(buffer_count))
        except Exception:
            pass
    return pl.BlockSpec((TK, TN), index_map)


# ------------------------------- wrapper --------------------------------------


def feed_forward_pallas(x, weight_t, bias, *, indices=None, negative_slope=0.1,
                        residual=False, compute_dtype=None, out_dtype=None,
                        tm=None, tn=None, tk=None):
    """Pallas implementation of FeedForward.forward.

    x:        (batch, n_inp)
    weight_t: (n_inp, n_out)  pre-transposed/cast nn.Linear weight (prepare_weight)
    bias:     (n_out,)
    indices:  optional 1-D int array selecting output units (subset of n_out)
    tm/tn/tk: optional tile overrides (testing / tuning).
    """
    if compute_dtype is None:
        compute_dtype = weight_t.dtype

    if indices is not None:
        weight_t = weight_t[:, indices]      # columns of W^T = selected output units
        bias = bias[indices]

    M, K = x.shape
    Kw, N = weight_t.shape
    assert Kw == K, "weight_t must be (n_inp, n_out)"
    if residual:
        assert N == K, "residual=True requires the output width to equal n_inp"

    out_dtype = x.dtype if out_dtype is None else out_dtype
    csize = jnp.dtype(compute_dtype).itemsize
    osize = jnp.dtype(out_dtype).itemsize

    TM, TN, TK, single_k, vmem_cap = _select_tiles(
        M, N, K, compute_dtype, out_dtype, residual)
    if tm is not None:
        TM = tm
    if tn is not None:
        TN = tn
    if tk is not None:
        TK = tk
        single_k = _round_up(K, TK) == TK

    Mp, Np, Kp = _round_up(M, TM), _round_up(N, TN), _round_up(K, TK)

    # Megacore: make sure at least 2 parallel blocks exist when N allows it,
    # otherwise one v7x TensorCore idles.
    if tn is None and (Mp // TM) == 1 and (Np // TN) == 1 and Np >= 256:
        TN = _round_up((N + 1) // 2, 128)
        Np = _round_up(N, TN)

    # --- operand prep: cast once, pad only when required ----------------------
    x_c = x.astype(compute_dtype)
    x_p = x_c if (Mp == M and Kp == K) else jnp.pad(x_c, ((0, Mp - M), (0, Kp - K)))
    w_c = weight_t.astype(compute_dtype)     # no-op when prepare_weight already cast
    wt_p = w_c if (Kp == K and Np == N) else jnp.pad(w_c, ((0, Kp - K), (0, Np - N)))
    b_c = bias.astype(jnp.float32)
    b_p = (b_c if Np == N else jnp.pad(b_c, (0, Np - N))).reshape(1, Np)

    res_p = None
    if residual:
        if Np == Kp:
            res_p = x_p                      # alias the padded activations: free
        else:
            res_p = x_c if (Mp == M and Np == N) else jnp.pad(
                x_c, ((0, Mp - M), (0, Np - N)))

    # Small-M weight streaming: deeper-buffered weight DMAs hide HBM latency.
    small_m_stream = (Mp // TM == 1) and TM <= 256
    n_weight_blocks = (Np // TN) * (Kp // TK)
    weight_buffers = 3 if (small_m_stream and n_weight_blocks >= 3) else None

    # --- grid / specs ---------------------------------------------------------
    if single_k:
        grid = (Mp // TM, Np // TN)
        x_map = lambda i, j: (i, 0)
        w_map = lambda i, j: (0, j)
        b_map = lambda i, j: (0, j)
        o_map = lambda i, j: (i, j)
        dims = ("parallel", "parallel")
        kernel = functools.partial(_ffn_kernel_single_k,
                                   negative_slope=negative_slope,
                                   residual=residual)
        scratch = []
    else:
        grid = (Mp // TM, Np // TN, Kp // TK)
        x_map = lambda i, j, k: (i, k)
        w_map = lambda i, j, k: (k, j)
        b_map = lambda i, j, k: (0, j)
        o_map = lambda i, j, k: (i, j)
        dims = ("parallel", "parallel", "arbitrary")
        kernel = functools.partial(_ffn_kernel_multi_k,
                                   negative_slope=negative_slope,
                                   residual=residual)
        scratch = [pltpu.VMEM((TM, TN), jnp.float32)]

    in_specs = [
        pl.BlockSpec((TM, TK), x_map),
        _make_weight_spec(TK, TN, w_map, weight_buffers),
        pl.BlockSpec((1, TN), b_map),
    ]
    inputs = [x_p, wt_p, b_p]
    if residual:
        in_specs.append(pl.BlockSpec((TM, TN), o_map))
        inputs.append(res_p)

    # --- VMEM budget (derived from the actual buffer set, with headroom) ------
    need = (2 * TM * TK * csize
            + (weight_buffers or 2) * TK * TN * csize
            + 2 * TN * 4
            + 2 * TM * TN * osize)
    if residual:
        need += 2 * TM * TN * csize
    if not single_k:
        need += TM * TN * 4
    vmem_limit = int(min(vmem_cap, max(32 << 20, int(1.5 * need))))

    bytes_accessed = Mp * Kp * csize + Kp * Np * csize + Np * 4 + Mp * Np * osize
    if residual:
        bytes_accessed += Mp * Np * csize
    cost = pl.CostEstimate(flops=2 * Mp * Np * Kp, transcendentals=0,
                           bytes_accessed=bytes_accessed)

    out_p = pl.pallas_call(
        kernel,
        out_shape=jax.ShapeDtypeStruct((Mp, Np), out_dtype),
        grid=grid,
        in_specs=in_specs,
        out_specs=pl.BlockSpec((TM, TN), o_map),
        scratch_shapes=scratch,
        compiler_params=pltpu.CompilerParams(
            dimension_semantics=dims,
            vmem_limit_bytes=vmem_limit,
        ),
        cost_estimate=cost,
    )(*inputs)

    if Mp != M or Np != N:
        out_p = out_p[:M, :N]
    return out_p


# ------------------------------ reference ------------------------------------


def _reference(x, weight, bias, *, indices=None, negative_slope=0.1, residual=False):
    if indices is not None:
        weight = weight[indices]
        bias = bias[indices]
    y = x @ weight.T + bias
    y = jnp.where(y >= 0, y, negative_slope * y)
    if residual:
        y = y + x
    return y


if __name__ == "__main__":
    key = jax.random.PRNGKey(0)
    k_x, k_w, k_b, k_idx, k_x2, k_w2, k_b2 = jax.random.split(key, 7)

    batch, n_inp, n_out = 8, 32, 32

    x = jax.random.normal(k_x, (batch, n_inp), dtype=jnp.float32)
    bound = 1.0 / jnp.sqrt(jnp.float32(n_inp))
    weight = jax.random.uniform(k_w, (n_out, n_inp), jnp.float32, -bound, bound)
    bias = jax.random.uniform(k_b, (n_out,), jnp.float32, -bound, bound)

    # One-time parameter prep (outside the hot path): transpose + cast.
    wt_bf16 = prepare_weight(weight, jnp.bfloat16)
    wt_f32 = prepare_weight(weight, jnp.float32)

    # Case 1: plain FFN (bf16 MXU operands, f32 accumulate, collapsed-K path)
    y1 = feed_forward_pallas(x, wt_bf16, bias)
    y1_ref = _reference(x, weight, bias)

    # Case 2: residual=True (n_out == n_inp); residual aliases the bf16 x panel
    y2 = feed_forward_pallas(x, wt_bf16, bias, residual=True)
    y2_ref = _reference(x, weight, bias, residual=True)

    # Case 3: indices selecting a subset of output units
    indices = jax.random.permutation(k_idx, n_out)[:16]
    y3 = feed_forward_pallas(x, wt_bf16, bias, indices=indices)
    y3_ref = _reference(x, weight, bias, indices=indices)

    # Case 4: full-f32 compute path (exactness check of the kernel structure)
    y4 = feed_forward_pallas(x, wt_f32, bias, residual=True)
    y4_ref = y2_ref

    # Case 5: forced small tiles -> exercises the multi-K accumulator kernel and
    # the Buffered(3) small-M weight-stream path.
    M2, K2, N2 = 16, 256, 384
    x2 = jax.random.normal(k_x2, (M2, K2), dtype=jnp.float32)
    bound2 = 1.0 / jnp.sqrt(jnp.float32(K2))
    w2 = jax.random.uniform(k_w2, (N2, K2), jnp.float32, -bound2, bound2)
    b2 = jax.random.uniform(k_b2, (N2,), jnp.float32, -bound2, bound2)
    wt2 = prepare_weight(w2, jnp.bfloat16)
    y5 = feed_forward_pallas(x2, wt2, b2, tn=128, tk=128)
    y5_ref = _reference(x2, w2, b2)

    jax.block_until_ready((y1, y2, y3, y4, y5))

    # bf16 operands -> looser tolerance; f32 path -> tight tolerance.
    assert jnp.allclose(y1, y1_ref, atol=5e-2, rtol=5e-2)
    assert jnp.allclose(y2, y2_ref, atol=5e-2, rtol=5e-2)
    assert jnp.allclose(y3, y3_ref, atol=5e-2, rtol=5e-2)
    assert jnp.allclose(y4, y4_ref, atol=1e-5, rtol=1e-5)
    assert jnp.allclose(y5, y5_ref, atol=5e-2, rtol=5e-2)

    print("KERNEL_OK")
</pallas_src>

<mosaic_0001>
module attributes {stable_mosaic.version = 11 : i64} {
  func.func @_ffn_kernel_single_k(%arg0: i32, %arg1: i32, %arg2: memref<16x128xbf16, #tpu.memory_space<vmem>>, %arg3: memref<128x128xbf16, #tpu.memory_space<vmem>>, %arg4: memref<1x128xf32, #tpu.memory_space<vmem>>, %arg5: memref<16x128xf32, #tpu.memory_space<vmem>>) attributes {dimension_semantics = [#tpu.dimension_semantics<parallel>, #tpu.dimension_semantics<parallel>], iteration_bounds = array<i64: 1, 1>, scalar_prefetch = 0 : i64, scratch_operands = 0 : i64, tpu.core_type = #tpu.core_type<tc>, window_params = [{transform_indices = @transform_0, window_bounds = array<i64: 16, 128>}, {transform_indices = @transform_1, window_bounds = array<i64: 128, 128>}, {transform_indices = @transform_2, window_bounds = array<i64: 1, 128>}, {transform_indices = @transform_3, window_bounds = array<i64: 16, 128>}]} {
    %c0 = arith.constant 0 : index
    %c0_0 = arith.constant 0 : index
    %0 = vector.load %arg2[%c0, %c0_0] : memref<16x128xbf16, #tpu.memory_space<vmem>>, vector<16x128xbf16>
    %c0_1 = arith.constant 0 : index
    %c0_2 = arith.constant 0 : index
    %1 = vector.load %arg3[%c0_1, %c0_2] : memref<128x128xbf16, #tpu.memory_space<vmem>>, vector<128x128xbf16>
    %cst = arith.constant dense<0.000000e+00> : vector<16x128xf32>
    %2 = tpu.matmul %0, %1, %cst {dimension_numbers = #tpu.dot_dimension_numbers<[1], [0], [0], [1], [0, 0, 1, 1], [], []>} : vector<16x128xbf16>, vector<128x128xbf16>, vector<16x128xf32> -> vector<16x128xf32>
    %c0_3 = arith.constant 0 : index
    %c0_4 = arith.constant 0 : index
    %3 = vector.load %arg4[%c0_3, %c0_4] : memref<1x128xf32, #tpu.memory_space<vmem>>, vector<1x128xf32>
    %4 = vector.broadcast %3 : vector<1x128xf32> to vector<16x128xf32>
    %5 = arith.addf %2, %4 : vector<16x128xf32>
    %cst_5 = arith.constant 1.000000e-01 : f32
    %6 = vector.broadcast %cst_5 : f32 to vector<16x128xf32>
    %7 = arith.mulf %6, %5 : vector<16x128xf32>
    %8 = arith.maximumf %5, %7 : vector<16x128xf32>
    %c0_6 = arith.constant 0 : index
    %c0_7 = arith.constant 0 : index
    %9 = vector.load %arg5[%c0_6, %c0_7] : memref<16x128xf32, #tpu.memory_space<vmem>>, vector<16x128xf32>
    tpu.vector_store %arg5[%c0_6, %c0_7], %8 {strides = array<i32>} : memref<16x128xf32, #tpu.memory_space<vmem>>, vector<16x128xf32>,
    return
  }
  func.func @transform_0(%arg0: i32, %arg1: i32) -> (i32, i32) {
    %c0_i32 = arith.constant 0 : i32
    %c0_i32_0 = arith.constant 0 : i32
    return %arg0, %c0_i32 : i32, i32
  }
  func.func @transform_1(%arg0: i32, %arg1: i32) -> (i32, i32) {
    %c0_i32 = arith.constant 0 : i32
    %c0_i32_0 = arith.constant 0 : i32
    return %c0_i32, %arg1 : i32, i32
  }
  func.func @transform_2(%arg0: i32, %arg1: i32) -> (i32, i32) {
    %c0_i32 = arith.constant 0 : i32
    %c0_i32_0 = arith.constant 0 : i32
    return %c0_i32, %arg1 : i32, i32
  }
  func.func @transform_3(%arg0: i32, %arg1: i32) -> (i32, i32) {
    %c0_i32 = arith.constant 0 : i32
    return %arg0, %arg1 : i32, i32
  }
}

</mosaic_0001>

<bundles_post_ra>
// kernel: tpu_custom_call.1
= control target key start
LH: loop header
LB: loop body
LE: loop exit
PB: predicated region body
PF: predicated region fallthrough
CT: control target
= control target key end

     0   :  { %8 = vsyncpa [#allocation3], 0  ;;  %s385_s0 = inlined_call_operand.hbm [shape: bf16[16,128], index: 0, kind: input, shape index: {}]   ;;  %s386_s1 = inlined_call_operand.hbm [shape: bf16[128,128], index: 1, kind: input, shape index: {}]   ;;  %s387_s2 = inlined_call_operand.vmem [shape: f32[1,128], index: 2, kind: input, shape index: {}]   ;;  %s388_s3 = inlined_call_operand.hbm [shape: f32[16,128], index: 3, kind: output, shape index: {}]  }
   0x1   :  { %9 = vsyncpa [#allocation6], 0 }
   0x2   :  { %10 = vsyncpa [#allocation4], 0  ;;  %s317_s12 = smov [#allocation2]   ;;  %s245_s16 = scalar_lea.hbm %s385_s0, 128 }
   0x3   :  { %s16_s13 = sshll.u32 %s317_s12, 4  ;;  %p246_p0 = scmp.ne.s32.totalorder %s385_s0, %s245_s16  ;;  %s17_s13 = int_to_ptr.vmem [resolvable:$true] %s16_s13 }
   0x4   :  { %p249_p1 = scmp.lt.u32.totalorder %s245_s16, %s385_s0 }
   0x6   :  { %p251_p2 = pnand %p249_p1, %p246_p0 }
   0x8   :  { %254 = shalt.err (!%p251_p2)
}
   0x9   :  { %s255_s21 = scalar_lea.vmem %s17_s13, 128  ;;  %p260_p4 = scmp.lt.s32.totalorder %s17_s13, %s17_s13 }
   0xa   :  { %p256_p3 = scmp.ne.s32.totalorder %s17_s13, %s255_s21  ;;  %p261_p5 = scmp.lt.s32.totalorder %s255_s21, %s255_s21 }
   0xc   :  { %p262_p6 = por %p261_p5, %p260_p4 }
   0xe   :  { %p263_p7 = pnand %p262_p6, %p256_p3 }
  0x10   :  { %266 = shalt.err (!%p263_p7)
}
  0x11   :  { %s318_s22 = smov 64   ;;  %s319_s23 = smov 4  }
  0x12   :  { %22 = dma.hbm_to_vmem [thread:$0]  %s385_s0, 128, %s17_s13, [#allocation3], %s318_s22, %s318_s22, %s319_s23  }
  0x13   :  { %s320_s26 = smov [#allocation5]   ;;  %s267_s30 = scalar_lea.hbm %s386_s1, 1024 }
  0x14   :  { %s28_s27 = sshll.u32 %s320_s26, 4  ;;  %p268_p8 = scmp.ne.s32.totalorder %s386_s1, %s267_s30  ;;  %s29_s27 = int_to_ptr.vmem [resolvable:$true] %s28_s27 }
  0x15   :  { %p271_p9 = scmp.lt.u32.totalorder %s267_s30, %s386_s1 }
  0x17   :  { %p273_p10 = pnand %p271_p9, %p268_p8 }
  0x19   :  { %276 = shalt.err (!%p273_p10)
}
  0x1a   :  { %s277_s8 = scalar_lea.vmem %s29_s27, 1024  ;;  %p282_p12 = scmp.lt.s32.totalorder %s29_s27, %s29_s27 }
  0x1b   :  { %p278_p11 = scmp.ne.s32.totalorder %s29_s27, %s277_s8  ;;  %p283_p13 = scmp.lt.s32.totalorder %s277_s8, %s277_s8 }
  0x1d   :  { %p284_p0 = por %p283_p13, %p282_p12 }
  0x1f   :  { %p285_p1 = pnand %p284_p0, %p278_p11 }
  0x21   :  { %288 = shalt.err (!%p285_p1)
}
  0x22   :  { %34 = dma.hbm_to_vmem [thread:$0]  %s386_s1, 1024, %s29_s27, [#allocation6], %s318_s22, %s318_s22, %s319_s23  }
  0x23   :  { %311 = dma.done.wait [#allocation3], 128  }
  0x24   :  { %312 = vsyncadd [#allocation3], 4294967168 }
  0x25   :  { %313 = dma.done.wait [#allocation6], 1024  }
  0x26   :  { %314 = vsyncadd [#allocation6], 4294966272  ;;  %v321_v0 = vmov 0.0   ;;  %vm322_vm0 = vmmov 0   ;;  %v236_v1 = vld [vmem:[#allocation5] sm:$0xff]   ;;  %v237_v2 = vld [vmem:[#allocation5 + $0x8] sm:$0xff]  }
  0x27   :  { %207 = vmatprep.subr.bf16.mxu0 %v321_v0  ;;  %223 = vmatprep.mubr.msk.bf16.mxu0 %vm322_vm0, %v321_v0  ;;  %v238_v3 = vld [vmem:[#allocation5 + $0x10] sm:$0xff]   ;;  %v239_v4 = vld [vmem:[#allocation5 + $0x18] sm:$0xff]   ;;  %v240_v5 = vld [vmem:[#allocation5 + $0x20] sm:$0xff]   ;;  %s323_s11 = smov [#allocation7]  }
  0x28   :  { %208 = vmatpush3.bf16.msra.mxu0 %v236_v1  ;;  %v241_v6 = vld [vmem:[#allocation5 + $0x28] sm:$0xff]   ;;  %v242_v7 = vld [vmem:[#allocation5 + $0x30] sm:$0xff]   ;;  %v243_v8 = vld [vmem:[#allocation5 + $0x38] sm:$0xff]   ;;  %s175_s12 = sshll.u32 %s323_s11, 4  ;;  %s176_s12 = int_to_ptr.vmem [resolvable:$true] %s175_s12 }
  0x29   :  { %209 = vmatprep.subr.bf16.mxu0 %v321_v0  ;;  %v244_v9 = vld [vmem:[#allocation2] sm:$0xff]   ;;  %s289_s13 = scalar_lea.vmem %s176_s12, 256  ;;  %p294_p3 = scmp.lt.s32.totalorder %s176_s12, %s176_s12 }
  0x2a   :  { %v188_v10 = vld [vmem:[%s387_s2] ss:$0 sm:$0xff]  ;;  %p290_p2 = scmp.ne.s32.totalorder %s176_s12, %s289_s13  ;;  %p295_p4 = scmp.lt.s32.totalorder %s289_s13, %s289_s13 }
  0x2c   :  { %210 = vmatpush3.bf16.msra.mxu0 %v237_v2  ;;  %p296_p5 = por %p295_p4, %p294_p3 }
  0x2d   :  { %211 = vmatprep.subr.bf16.mxu0 %v321_v0 }
  0x2e   :  { %p297_p6 = pnand %p296_p5, %p290_p2 }
  0x30   :  { %212 = vmatpush3.bf16.msra.mxu0 %v238_v3 }
  0x31   :  { %213 = vmatprep.subr.bf16.mxu0 %v321_v0 }
  0x34   :  { %214 = vmatpush3.bf16.msra.mxu0 %v239_v4 }
  0x35   :  { %215 = vmatprep.subr.bf16.mxu0 %v321_v0 }
  0x38   :  { %216 = vmatpush3.bf16.msra.mxu0 %v240_v5 }
  0x39   :  { %217 = vmatprep.subr.bf16.mxu0 %v321_v0 }
  0x3c   :  { %218 = vmatpush3.bf16.msra.mxu0 %v241_v6 }
  0x3d   :  { %219 = vmatprep.subr.bf16.mxu0 %v321_v0 }
  0x40   :  { %220 = vmatpush3.bf16.msra.mxu0 %v242_v7 }
  0x41   :  { %221 = vmatprep.subr.bf16.mxu0 %v321_v0 }
  0x44   :  { %222 = vmatpush3.bf16.msra.mxu0 %v243_v8 }
  0x47   :  { %224 = vmatmul.mubr.bf16.vlgmr.msra.gmra.mrb[0].mxu0 %v244_v9 }
 0x11a   :  { %v157_v11 = vpop.f32.mrb[0].mxu0 }
 0x11b   :  { %v158_v12 = vadd.f32 %v188_v10, %v157_v11  ;;  %v225_v13 = vpop.f32.mrb[1].mxu0 }
 0x11c   :  { %v160_v14 = vpop.f32.mrb[2].mxu0 }
 0x11d   :  { %v164_v15 = vmul.f32 0.1, %v158_v12  ;;  %v161_v16 = vadd.f32 %v188_v10, %v160_v14  ;;  %v226_v17 = vpop.f32.mrb[3].mxu0 }
 0x11f   :  { %v166_v18 = vmax.f32 %v158_v12, %v164_v15  ;;  %v165_v19 = vmul.f32 0.1, %v161_v16 }
 0x121   :  { %168 = vst [vmem:[#allocation7] sm:$0xff] %v166_v18  ;;  %v167_v20 = vmax.f32 %v161_v16, %v165_v19 }
 0x123   :  { %169 = vst [vmem:[#allocation7 + $0x8] sm:$0xff] %v167_v20 }
 0x124   :  { %300 = shalt.err (!%p297_p6)
}
 0x125   :  { %s301_s15 = scalar_lea.hbm %s388_s3, 256 }
 0x126   :  { %p302_p7 = scmp.ne.s32.totalorder %s388_s3, %s301_s15  ;;  %p305_p8 = scmp.lt.u32.totalorder %s301_s15, %s388_s3 }
 0x128   :  { %p307_p9 = pnand %p305_p8, %p302_p7 }
 0x12a   :  { %310 = shalt.err (!%p307_p9)
}
 0x12b   :  { %s324_s20 = smov 128   ;;  %s325_s21 = smov 8  }
 0x12c   :  { %181 = dma.vmem_to_hbm [thread:$0]  %s176_s12, 256, %s388_s3, [#allocation4], %s324_s20, %s324_s20, %s325_s21  }
 0x12d   :  { %315 = dma.done.wait [#allocation4], 256  }
 0x12e   :  { %316 = vsyncadd [#allocation4], 4294967040 }
 0x12f   :  { %185 = vsyncpa [#allocation3], 1 }
 0x130   :  { %186 = vsyncpa [#allocation6], 1 }
 0x131   :  { %187 = vsyncpa [#allocation4], 1 }

</bundles_post_ra>
